<compile_context>
chip_gen: v7x
topology: tpu7x:2x2x1
jax: 0.10.0
libtpu: 0.0.40
codegen_flags: <defaults>
</compile_context>

<pallas_src>
import math
import functools

import jax
import jax.numpy as jnp
from jax import lax
from jax.experimental import pallas as pl
from jax.experimental.pallas import tpu as pltpu


_INV_SQRT2 = 1.0 / math.sqrt(2.0)


def _round_up(a, b):
    return (a + b - 1) // b * b


def _ffn_kernel(x_ref, w1_ref, b1_ref, w2_ref, b2_ref, o_ref, acc_ref):
    k = pl.program_id(1)

    @pl.when(k == 0)
    def _():
        acc_ref[...] = jnp.zeros_like(acc_ref)

    # First linear (one hidden tile): [tm, dim] @ [dim, th] -> [tm, th], f32 acc.
    h = jnp.dot(x_ref[...], w1_ref[...], preferred_element_type=jnp.float32)
    h = h + b1_ref[...]                      # (1, th) f32 bias, broadcasts over rows

    # Exact GELU in f32 (matches torch.nn.GELU(approximate='none')).
    h = 0.5 * h * (1.0 + lax.erf(h * _INV_SQRT2))

    # Dropout (eval) == identity.

    # Second linear: accumulate this hidden tile's contribution (f32 scratch).
    acc_ref[...] += jnp.dot(h.astype(w2_ref.dtype), w2_ref[...],
                            preferred_element_type=jnp.float32)

    @pl.when(k == pl.num_programs(1) - 1)
    def _():
        # Dropout (eval) == identity.
        o_ref[...] = (acc_ref[...] + b2_ref[...]).astype(o_ref.dtype)


@functools.partial(jax.jit, static_argnames=("tm", "th", "compute_dtype"))
def ffn_forward(x, w1, b1, w2, b2, *, tm=256, th=512, compute_dtype=jnp.bfloat16):
    """x: [..., dim]. w1: [dim, hidden], w2: [hidden, dim]. Returns x-shaped/dtyped array."""
    orig_shape = x.shape
    dim = x.shape[-1]
    hidden = w1.shape[1]
    x2d = x.reshape(-1, dim)
    M = x2d.shape[0]

    # Lane-/tile-aligned padded sizes (no masked partial stores, no divisibility asserts).
    dim_p = _round_up(dim, 128)
    tm_eff = min(tm, _round_up(M, 16))
    M_p = _round_up(M, tm_eff)
    th_eff = min(th, _round_up(hidden, 128))
    hidden_p = _round_up(hidden, th_eff)

    cd = compute_dtype
    x_p = jnp.pad(x2d.astype(cd), ((0, M_p - M), (0, dim_p - dim)))
    w1_p = jnp.pad(w1.astype(cd), ((0, dim_p - dim), (0, hidden_p - hidden)))
    w2_p = jnp.pad(w2.astype(cd), ((0, hidden_p - hidden), (0, dim_p - dim)))
    b1_p = jnp.pad(b1.astype(jnp.float32), (0, hidden_p - hidden)).reshape(1, hidden_p)
    b2_p = jnp.pad(b2.astype(jnp.float32), (0, dim_p - dim)).reshape(1, dim_p)

    grid = (M_p // tm_eff, hidden_p // th_eff)

    itemsize = jnp.dtype(cd).itemsize
    cost = pl.CostEstimate(
        flops=4 * M_p * dim_p * hidden_p,          # two matmuls, 2 flops/MAC
        transcendentals=M_p * hidden_p,            # erf per hidden activation
        bytes_accessed=(M_p * dim_p * itemsize     # x
                        + dim_p * hidden_p * itemsize   # W1
                        + hidden_p * dim_p * itemsize   # W2
                        + (hidden_p + dim_p) * 4        # biases (f32)
                        + M_p * dim_p * jnp.dtype(x.dtype).itemsize),  # out
    )

    out = pl.pallas_call(
        _ffn_kernel,
        out_shape=jax.ShapeDtypeStruct((M_p, dim_p), x.dtype),
        grid_spec=pltpu.PrefetchScalarGridSpec(
            num_scalar_prefetch=0,
            grid=grid,
            in_specs=[
                pl.BlockSpec((tm_eff, dim_p), lambda i, k: (i, 0)),   # x row tile
                pl.BlockSpec((dim_p, th_eff), lambda i, k: (0, k)),   # W1 hidden tile
                pl.BlockSpec((1, th_eff), lambda i, k: (0, k)),       # b1 hidden tile
                pl.BlockSpec((th_eff, dim_p), lambda i, k: (k, 0)),   # W2 hidden tile
                pl.BlockSpec((1, dim_p), lambda i, k: (0, 0)),        # b2
            ],
            out_specs=pl.BlockSpec((tm_eff, dim_p), lambda i, k: (i, 0)),
            scratch_shapes=[pltpu.VMEM((tm_eff, dim_p), jnp.float32)],
        ),
        compiler_params=pltpu.CompilerParams(
            dimension_semantics=("parallel", "arbitrary"),
            vmem_limit_bytes=48 * 1024 * 1024,
        ),
        cost_estimate=cost,
    )(x_p, w1_p, b1_p, w2_p, b2_p)

    return out[:M, :dim].reshape(orig_shape)


def init_ffn_params(key, dim, expansion_factor=4, dtype=jnp.float32):
    """Deterministic init mimicking nn.Linear defaults (uniform +/- 1/sqrt(fan_in))."""
    hidden = dim * expansion_factor
    k1, k2, k3, k4 = jax.random.split(key, 4)
    bound1 = 1.0 / math.sqrt(dim)
    bound2 = 1.0 / math.sqrt(hidden)
    # stored as [in, out] (transpose of PyTorch's [out, in])
    w1 = jax.random.uniform(k1, (dim, hidden), dtype, -bound1, bound1)
    b1 = jax.random.uniform(k2, (hidden,), dtype, -bound1, bound1)
    w2 = jax.random.uniform(k3, (hidden, dim), dtype, -bound2, bound2)
    b2 = jax.random.uniform(k4, (dim,), dtype, -bound2, bound2)
    return w1, b1, w2, b2


def ffn_reference(x, w1, b1, w2, b2, compute_dtype=jnp.float32):
    cd = compute_dtype
    h = jnp.dot(x.astype(cd), w1.astype(cd), preferred_element_type=jnp.float32) + b1
    h = 0.5 * h * (1.0 + lax.erf(h * _INV_SQRT2))
    return jnp.dot(h.astype(cd), w2.astype(cd), preferred_element_type=jnp.float32) + b2


if __name__ == "__main__":
    key = jax.random.PRNGKey(0)
    kx, kp = jax.random.split(key)

    batch, seq, dim = 2, 8, 128          # hidden = dim * 4 = 512
    x = jax.random.normal(kx, (batch, seq, dim), dtype=jnp.float32)
    w1, b1, w2, b2 = init_ffn_params(kp, dim, expansion_factor=4)

    # Small shapes: th=256 -> 2 hidden tiles, exercising the accumulation path.
    out = ffn_forward(x, w1, b1, w2, b2, tm=128, th=256)
    out = jax.block_until_ready(out)
    assert out.shape == x.shape and out.dtype == x.dtype

    # Strict check vs a reference using the same bf16 matmul operands.
    ref_bf16 = ffn_reference(x, w1, b1, w2, b2, compute_dtype=jnp.bfloat16)
    assert jnp.allclose(out, ref_bf16, atol=5e-3, rtol=5e-3), float(
        jnp.max(jnp.abs(out - ref_bf16)))

    # Loose check vs full-f32 module semantics (bf16 quantization tolerance).
    ref_f32 = ffn_reference(x, w1, b1, w2, b2, compute_dtype=jnp.float32)
    assert jnp.allclose(out, ref_f32, atol=2e-2, rtol=2e-2), float(
        jnp.max(jnp.abs(out - ref_f32)))

    print("KERNEL_OK")
</pallas_src>

<mosaic_0001>
module attributes {stable_mosaic.version = 11 : i64} {
  func.func @_ffn_kernel(%arg0: i32, %arg1: i32, %arg2: memref<16x128xbf16, #tpu.memory_space<vmem>>, %arg3: memref<128x256xbf16, #tpu.memory_space<vmem>>, %arg4: memref<1x256xf32, #tpu.memory_space<vmem>>, %arg5: memref<256x128xbf16, #tpu.memory_space<vmem>>, %arg6: memref<1x128xf32, #tpu.memory_space<vmem>>, %arg7: memref<16x128xf32, #tpu.memory_space<vmem>>, %arg8: memref<16x128xf32, #tpu.memory_space<vmem>>) attributes {dimension_semantics = [#tpu.dimension_semantics<parallel>, #tpu.dimension_semantics<arbitrary>], iteration_bounds = array<i64: 1, 2>, scalar_prefetch = 0 : i64, scratch_operands = 1 : i64, tpu.core_type = #tpu.core_type<tc>, window_params = [{transform_indices = @transform_0, window_bounds = array<i64: 16, 128>}, {transform_indices = @transform_1, window_bounds = array<i64: 128, 256>}, {transform_indices = @transform_2, window_bounds = array<i64: 1, 256>}, {transform_indices = @transform_3, window_bounds = array<i64: 256, 128>}, {pipeline_mode = #tpu.pipeline_mode<synchronous>, transform_indices = @transform_4, window_bounds = array<i64: 1, 128>}, {transform_indices = @transform_5, window_bounds = array<i64: 16, 128>}]} {
    %c0_i32 = arith.constant 0 : i32
    %0 = arith.cmpi eq, %arg1, %c0_i32 : i32
    %1 = arith.extui %0 : i1 to i32
    %c0_i32_0 = arith.constant 0 : i32
    %2 = arith.cmpi ne, %1, %c0_i32_0 : i32
    scf.if %2 {
      %cst_17 = arith.constant 0.000000e+00 : f32
      %26 = vector.broadcast %cst_17 : f32 to vector<16x128xf32>
      %c0_18 = arith.constant 0 : index
      %c0_19 = arith.constant 0 : index
      %27 = vector.load %arg8[%c0_18, %c0_19] : memref<16x128xf32, #tpu.memory_space<vmem>>, vector<16x128xf32>
      tpu.vector_store %arg8[%c0_18, %c0_19], %26 {strides = array<i32>} : memref<16x128xf32, #tpu.memory_space<vmem>>, vector<16x128xf32>,
    } else {
    }
    %c0 = arith.constant 0 : index
    %c0_1 = arith.constant 0 : index
    %3 = vector.load %arg2[%c0, %c0_1] : memref<16x128xbf16, #tpu.memory_space<vmem>>, vector<16x128xbf16>
    %c0_2 = arith.constant 0 : index
    %c0_3 = arith.constant 0 : index
    %4 = vector.load %arg3[%c0_2, %c0_3] : memref<128x256xbf16, #tpu.memory_space<vmem>>, vector<128x256xbf16>
    %cst = arith.constant dense<0.000000e+00> : vector<16x256xf32>
    %5 = tpu.matmul %3, %4, %cst {dimension_numbers = #tpu.dot_dimension_numbers<[1], [0], [0], [1], [0, 0, 1, 1], [], []>} : vector<16x128xbf16>, vector<128x256xbf16>, vector<16x256xf32> -> vector<16x256xf32>
    %c0_4 = arith.constant 0 : index
    %c0_5 = arith.constant 0 : index
    %6 = vector.load %arg4[%c0_4, %c0_5] : memref<1x256xf32, #tpu.memory_space<vmem>>, vector<1x256xf32>
    %7 = vector.broadcast %6 : vector<1x256xf32> to vector<16x256xf32>
    %8 = arith.addf %5, %7 : vector<16x256xf32>
    %cst_6 = arith.constant 5.000000e-01 : f32
    %9 = vector.broadcast %cst_6 : f32 to vector<16x256xf32>
    %10 = arith.mulf %9, %8 : vector<16x256xf32>
    %cst_7 = arith.constant 0.707106769 : f32
    %11 = vector.broadcast %cst_7 : f32 to vector<16x256xf32>
    %12 = arith.mulf %8, %11 : vector<16x256xf32>
    %13 = math.erf %12 : vector<16x256xf32>
    %cst_8 = arith.constant 1.000000e+00 : f32
    %14 = vector.broadcast %cst_8 : f32 to vector<16x256xf32>
    %15 = arith.addf %14, %13 : vector<16x256xf32>
    %16 = arith.mulf %10, %15 : vector<16x256xf32>
    %c0_9 = arith.constant 0 : index
    %c0_10 = arith.constant 0 : index
    %17 = vector.load %arg8[%c0_9, %c0_10] : memref<16x128xf32, #tpu.memory_space<vmem>>, vector<16x128xf32>
    %18 = arith.truncf %16 : vector<16x256xf32> to vector<16x256xbf16>
    %c0_11 = arith.constant 0 : index
    %c0_12 = arith.constant 0 : index
    %19 = vector.load %arg5[%c0_11, %c0_12] : memref<256x128xbf16, #tpu.memory_space<vmem>>, vector<256x128xbf16>
    %cst_13 = arith.constant dense<0.000000e+00> : vector<16x128xf32>
    %20 = tpu.matmul %18, %19, %cst_13 {dimension_numbers = #tpu.dot_dimension_numbers<[1], [0], [0], [1], [0, 0, 1, 1], [], []>} : vector<16x256xbf16>, vector<256x128xbf16>, vector<16x128xf32> -> vector<16x128xf32>
    %21 = arith.addf %17, %20 : vector<16x128xf32>
    %c0_14 = arith.constant 0 : index
    %c0_15 = arith.constant 0 : index
    %22 = vector.load %arg8[%c0_14, %c0_15] : memref<16x128xf32, #tpu.memory_space<vmem>>, vector<16x128xf32>
    tpu.vector_store %arg8[%c0_14, %c0_15], %21 {strides = array<i32>} : memref<16x128xf32, #tpu.memory_space<vmem>>, vector<16x128xf32>,
    %c1_i32 = arith.constant 1 : i32
    %23 = arith.cmpi eq, %arg1, %c1_i32 : i32
    %24 = arith.extui %23 : i1 to i32
    %c0_i32_16 = arith.constant 0 : i32
    %25 = arith.cmpi ne, %24, %c0_i32_16 : i32
    scf.if %25 {
      %c0_17 = arith.constant 0 : index
      %c0_18 = arith.constant 0 : index
      %26 = vector.load %arg8[%c0_17, %c0_18] : memref<16x128xf32, #tpu.memory_space<vmem>>, vector<16x128xf32>
      %c0_19 = arith.constant 0 : index
      %c0_20 = arith.constant 0 : index
      %27 = vector.load %arg6[%c0_19, %c0_20] : memref<1x128xf32, #tpu.memory_space<vmem>>, vector<1x128xf32>
      %28 = vector.broadcast %27 : vector<1x128xf32> to vector<16x128xf32>
      %29 = arith.addf %26, %28 : vector<16x128xf32>
      %c0_21 = arith.constant 0 : index
      %c0_22 = arith.constant 0 : index
      %30 = vector.load %arg7[%c0_21, %c0_22] : memref<16x128xf32, #tpu.memory_space<vmem>>, vector<16x128xf32>
      tpu.vector_store %arg7[%c0_21, %c0_22], %29 {strides = array<i32>} : memref<16x128xf32, #tpu.memory_space<vmem>>, vector<16x128xf32>,
    } else {
    }
    return
  }
  func.func @transform_0(%arg0: i32, %arg1: i32) -> (i32, i32) {
    %c0_i32 = arith.constant 0 : i32
    %c0_i32_0 = arith.constant 0 : i32
    return %arg0, %c0_i32 : i32, i32
  }
  func.func @transform_1(%arg0: i32, %arg1: i32) -> (i32, i32) {
    %c0_i32 = arith.constant 0 : i32
    %c0_i32_0 = arith.constant 0 : i32
    return %c0_i32, %arg1 : i32, i32
  }
  func.func @transform_2(%arg0: i32, %arg1: i32) -> (i32, i32) {
    %c0_i32 = arith.constant 0 : i32
    %c0_i32_0 = arith.constant 0 : i32
    return %c0_i32, %arg1 : i32, i32
  }
  func.func @transform_3(%arg0: i32, %arg1: i32) -> (i32, i32) {
    %c0_i32 = arith.constant 0 : i32
    %c0_i32_0 = arith.constant 0 : i32
    return %arg1, %c0_i32 : i32, i32
  }
  func.func @transform_4(%arg0: i32, %arg1: i32) -> (i32, i32) {
    %c0_i32 = arith.constant 0 : i32
    %c0_i32_0 = arith.constant 0 : i32
    %c0_i32_1 = arith.constant 0 : i32
    return %c0_i32, %c0_i32_0 : i32, i32
  }
  func.func @transform_5(%arg0: i32, %arg1: i32) -> (i32, i32) {
    %c0_i32 = arith.constant 0 : i32
    %c0_i32_0 = arith.constant 0 : i32
    return %arg0, %c0_i32 : i32, i32
  }
}

</mosaic_0001>

<bundles_post_ra>
// kernel: ffn_forward.1
= control target key start
LH: loop header
LB: loop body
LE: loop exit
PB: predicated region body
PF: predicated region fallthrough
CT: control target
= control target key end

     0   :  { %10 = vsyncpa [#allocation5], 0  ;;  %s1152_s18 = smov 0   ;;  %s1154_s19 = smov 0   ;;  %s1320_s0 = inlined_call_operand.vmem [shape: bf16[16,128], index: 0, kind: input, shape index: {}]   ;;  %s1321_s1 = inlined_call_operand.vmem [shape: bf16[128,512], index: 1, kind: input, shape index: {}]   ;;  %s1322_s2 = inlined_call_operand.vmem [shape: f32[1,512], index: 2, kind: input, shape index: {}]   ;;  %s1323_s3 = inlined_call_operand.vmem [shape: bf16[512,128], index: 3, kind: input, shape index: {}]   ;;  %s1324_s4 = inlined_call_operand.vmem [shape: f32[1,128], index: 4, kind: input, shape index: {}]   ;;  %s1325_s5 = inlined_call_operand.hbm [shape: f32[16,128], index: 5, kind: output, shape index: {}]  }
   0x1   :  { %s1156_s20 = smov 0   ;;  %s1158_s21 = smov 0  }
   0x2   :  { %s1160_s22 = smov 0  }
   0x3 LB: > { %s872_s23 = sadd.s32 4294967295, %s1115_s22   ;;  %s25_s24 = sadd.s32 1, %s1111_s21  ;;  %s1115_s22 = sphi %s1160_s22, %s16_s22   ;;  %s1111_s21 = sphi %s1158_s21, %s1330_s21   ;;  %s1107_s20 = sphi %s1156_s20, %s1329_s20   ;;  %s1103_s19 = sphi %s1154_s19, %s1328_s19   ;;  %s1099_s18 = sphi %s1152_s18, %s1327_s18  }
   0x4   : > { %p26_p0 = scmp.ge.s32.totalorder %s25_s24, 2  ;;  %p68_p1 = scmp.ne.s32.totalorder %s1103_s19, %s1099_s18 }
   0x5   : > { %p69_p2 = scmp.eq.s32.totalorder %s1115_s22, 0  ;;  %s61_s26 = sadd.s32 1, %s1103_s19 }
   0x6   : > { %s1332_s24 = smov (%p26_p0, %s25_s24), 0  ;;  %p875_p5 = scmp.ge.s32.totalorder %s1115_s22, 2 }
   0x7   : > { %p70_p3 = por %p69_p2, %p68_p1  ;;  %s58_s25 = ssub.s32 %s1111_s21, %s1332_s24 }
   0x8   : > { %p59_p4 = scmp.eq.s32.totalorder %s58_s25, 0  ;;  %205 = sbr.rel (%p875_p5) target bundleno = 27 (0x1b), region = 24 }
   0xa   : > { %s1188_s27 = scalar_select %p59_p4, %s1103_s19, %s61_s26  }
   0xf   : > { %208 = sbr.rel (!%p70_p3) target bundleno = 27 (0x1b), region = 28  ;;  %s210_s28 = sand.u32 (%p70_p3), 1, %s1103_s19  }
  0x10   : > { %s924_s29 = sshll.u32 (%p70_p3), %s1111_s21, 3  ;;  %s876_s30 = sshll.u32 (%p70_p3), %s210_s28, 7 }
  0x11   : > { %s1196_s8 = scalar_lea.vmem (%p70_p3), %s1321_s1, %s924_s29  ;;  %s212_s9 = scalar_lea.vmem (%p70_p3), [#allocation3], %s876_s30 }
  0x12   : > { %v273_v0 = vld [vmem:[%s1196_s8] sm:$0xff] (%p70_p3)  ;;  %v275_v1 = vld [vmem:[%s1196_s8 + $0x10] sm:$0xff] (%p70_p3) }
  0x13   : > { %v277_v2 = vld [vmem:[%s1196_s8 + $0x20] sm:$0xff] (%p70_p3)  ;;  %274 = vst [vmem:[%s212_s9] sm:$0xff] (%p70_p3), %v273_v0  ;;  %276 = vst [vmem:[%s212_s9 + $0x8] sm:$0xff] (%p70_p3), %v275_v1  ;;  %v279_v3 = vld [vmem:[%s1196_s8 + $0x30] sm:$0xff] (%p70_p3) }
  0x14   : > { %278 = vst [vmem:[%s212_s9 + $0x10] sm:$0xff] (%p70_p3), %v277_v2  ;;  %v281_v4 = vld [vmem:[%s1196_s8 + $0x40] sm:$0xff] (%p70_p3)  ;;  %v283_v5 = vld [vmem:[%s1196_s8 + $0x50] sm:$0xff] (%p70_p3)  ;;  %280 = vst [vmem:[%s212_s9 + $0x18] sm:$0xff] (%p70_p3), %v279_v3 }
  0x15   : > { %282 = vst [vmem:[%s212_s9 + $0x20] sm:$0xff] (%p70_p3), %v281_v4  ;;  %284 = vst [vmem:[%s212_s9 + $0x28] sm:$0xff] (%p70_p3), %v283_v5  ;;  %v285_v6 = vld [vmem:[%s1196_s8 + $0x60] sm:$0xff] (%p70_p3)  ;;  %v287_v7 = vld [vmem:[%s1196_s8 + $0x70] sm:$0xff] (%p70_p3) }
  0x16   : > { %v289_v8 = vld [vmem:[%s1196_s8 + $0x80] sm:$0xff]  ;;  %286 = vst [vmem:[%s212_s9 + $0x30] sm:$0xff] %v285_v6  ;;  %288 = vst [vmem:[%s212_s9 + $0x38] sm:$0xff] %v287_v7  ;;  %v291_v9 = vld [vmem:[%s1196_s8 + $0x90] sm:$0xff] }
  0x17   : > { %290 = vst [vmem:[%s212_s9 + $0x40] sm:$0xff] %v289_v8  ;;  %v293_v10 = vld [vmem:[%s1196_s8 + $0xa0] sm:$0xff]  ;;  %v295_v11 = vld [vmem:[%s1196_s8 + $0xb0] sm:$0xff]  ;;  %292 = vst [vmem:[%s212_s9 + $0x48] sm:$0xff] %v291_v9 }
  0x18   : > { %294 = vst [vmem:[%s212_s9 + $0x50] sm:$0xff] %v293_v10  ;;  %296 = vst [vmem:[%s212_s9 + $0x58] sm:$0xff] %v295_v11  ;;  %v297_v12 = vld [vmem:[%s1196_s8 + $0xc0] sm:$0xff]  ;;  %v299_v13 = vld [vmem:[%s1196_s8 + $0xd0] sm:$0xff] }
  0x19   : > { %v301_v14 = vld [vmem:[%s1196_s8 + $0xe0] sm:$0xff]  ;;  %298 = vst [vmem:[%s212_s9 + $0x60] sm:$0xff] %v297_v12  ;;  %300 = vst [vmem:[%s212_s9 + $0x68] sm:$0xff] %v299_v13  ;;  %v303_v15 = vld [vmem:[%s1196_s8 + $0xf0] sm:$0xff] }
  0x1a   : > { %302 = vst [vmem:[%s212_s9 + $0x70] sm:$0xff] %v301_v14  ;;  %304 = vst [vmem:[%s212_s9 + $0x78] sm:$0xff] %v303_v15 }
  0x1b PF: > { %p879_p6 = scmp.ge.s32.totalorder %s1115_s22, 1  ;;  %p326_p7 = scmp.lt.s32.totalorder %s1115_s22, 3 }
  0x1d   : > { %p327_p8 = pnand %p879_p6, %p326_p7 }
  0x1e   : > { %s333_s10 = sand.u32 (!%p327_p8), 1, %s1099_s18   ;;  %s881_s11 = sshll.u32 (!%p327_p8), %s1107_s20, 1 }
  0x1f   : > { %330 = sbr.rel (%p327_p8) target bundleno = 573 (0x23d), region = 74  ;;  %s880_s12 = sshll.u32 (!%p327_p8), %s333_s10, 7 }
  0x20   : > { %p377_p9 = scmp.lt.s32.totalorder (!%p327_p8), %s881_s11, 3  ;;  %s882_s13 = sshll.u32 (!%p327_p8), %s1107_s20, 5 }
  0x21   : > { %p382_p10 = scmp.lt.s32.totalorder (!%p327_p8), %s882_s13, 63  ;;  %s1230_s18 = scalar_lea.vmem (!%p327_p8), [#allocation3], %s880_s12 }
  0x22   : > { %p884_p11 = scmp.ne.s32.totalorder (!%p327_p8), %s1107_s20, 0 }
  0x26   : > { %s1334_s11 = smov (!%p377_p9, %s881_s11), 3  ;;  %s1336_s13 = smov (!%p382_p10, %s882_s13), 63 }
  0x27   : > { %s379_s16 = scalar_lea.vmem %s1322_s2, %s1334_s11  ;;  %s883_s17 = sshll.u32 %s1336_s13, 2  ;;  %v1117_v16 = vmov (!%p884_p11), 0.0  }
  0x28   : > { %s1228_s28 = scalar_lea.vmem %s1323_s3, %s883_s17  ;;  %392 = sbr.rel (%p884_p11) target bundleno = 47 (0x2f), region = 82  ;;  %393 = vst [vmem:[#allocation2] sm:$0xff] (!%p884_p11), %v1117_v16  ;;  %394 = vst [vmem:[#allocation2 + $0x8] sm:$0xff] (!%p884_p11), %v1117_v16 }
  0x2f PF: > { %v998_v17 = vld [vmem:[%s1230_s18 + $0x4] ss:$8 sps:$4 sm:$0xff]   ;;  %v1000_v18 = vld [vmem:[%s1230_s18] ss:$8 sps:$4 sm:$0xff]   ;;  %v1118_v19 = vmov 0   ;;  %v1023_v27 = vld [vmem:[%s1228_s28 + $0x40] sm:$0xff]   ;;  %v415_v51 = vlaneseq }
  0x30   : > { %543 = vmatprep.mubr.bf16.mxu0 %v1118_v19  ;;  %511 = vmatprep.subr.bf16.mxu0 %v998_v17  ;;  %v1001_v20 = vld [vmem:[%s1230_s18 + $0x14] ss:$8 sps:$4 sm:$0xff]   ;;  %v1003_v21 = vld [vmem:[%s1230_s18 + $0x10] ss:$8 sps:$4 sm:$0xff]   ;;  %v1004_v22 = vld [vmem:[%s1230_s18 + $0x24] ss:$8 sps:$4 sm:$0xff]  }
  0x31   : > { %512 = vmatpush1.bf16.msra.mxu0 %v1000_v18  ;;  %v1006_v23 = vld [vmem:[%s1230_s18 + $0x20] ss:$8 sps:$4 sm:$0xff]   ;;  %v1007_v24 = vld [vmem:[%s1230_s18 + $0x34] ss:$8 sps:$4 sm:$0xff]   ;;  %v1009_v25 = vld [vmem:[%s1230_s18 + $0x30] ss:$8 sps:$4 sm:$0xff]   ;;  %925 = vmatprep.subr.bf16.mxu1 %v1023_v27 }
  0x32   : > { %513 = vmatprep.subr.bf16.mxu0 %v1001_v20  ;;  %v1010_v26 = vld [vmem:[%s1230_s18 + $0x44] ss:$8 sps:$4 sm:$0xff]   ;;  %v1012_v28 = vld [vmem:[%s1230_s18 + $0x40] ss:$8 sps:$4 sm:$0xff]   ;;  %v1024_v29 = vld [vmem:[%s1228_s28] sm:$0xff]   ;;  %v416_v52 = vshrl.u32 %v415_v51, 7 }
  0x33   : > { %v1025_v30 = vld [vmem:[%s1228_s28 + $0x48] sm:$0xff]   ;;  %926 = vmatpush3.bf16.msra.mxu1 %v1024_v29  ;;  %v1016_v34 = vld [vmem:[%s1230_s18 + $0x64] ss:$8 sps:$4 sm:$0xff]   ;;  %v1018_v35 = vld [vmem:[%s1230_s18 + $0x60] ss:$8 sps:$4 sm:$0xff]   ;;  %p918_p12 = scmp.ne.s32.totalorder %s1107_s20, 1 }
  0x34   : > { %v1013_v31 = vld [vmem:[%s1230_s18 + $0x54] ss:$8 sps:$4 sm:$0xff]   ;;  %927 = vmatprep.subr.bf16.mxu1 %v1025_v30  ;;  %v1015_v33 = vld [vmem:[%s1230_s18 + $0x50] ss:$8 sps:$4 sm:$0xff]   ;;  %v1027_v39 = vld [vmem:[%s1228_s28 + $0x50] sm:$0xff]   ;;  %v417_v53 = vsub.s32 0, %v416_v52 }
  0x35   : > { %514 = vmatpush1.bf16.msra.mxu0 %v1003_v21  ;;  %v1026_v32 = vld [vmem:[%s1228_s28 + $0x8] sm:$0xff]   ;;  %v1022_v38 = vld [vmem:[%s1320_s0] sm:$0xff]   ;;  %v1028_v40 = vld [vmem:[%s1228_s28 + $0x10] sm:$0xff]   ;;  %v421_v55 = vsub.s32 1, %v416_v52 }
  0x36   : > { %515 = vmatprep.subr.bf16.mxu0 %v1004_v22  ;;  %v1019_v36 = vld [vmem:[%s1230_s18 + $0x74] ss:$8 sps:$4 sm:$0xff]   ;;  %v1021_v37 = vld [vmem:[%s1230_s18 + $0x70] ss:$8 sps:$4 sm:$0xff]   ;;  %v1029_v41 = vld [vmem:[%s1228_s28 + $0x58] sm:$0xff]  }
  0x37   : > { %928 = vmatpush3.bf16.msra.mxu1 %v1026_v32  ;;  %v1030_v42 = vld [vmem:[%s1228_s28 + $0x18] sm:$0xff]   ;;  %v1031_v43 = vld [vmem:[%s1228_s28 + $0x60] sm:$0xff]   ;;  %v1033_v45 = vld [vmem:[%s1228_s28 + $0x68] sm:$0xff]  }
  0x38   : > { %929 = vmatprep.subr.bf16.mxu1 %v1027_v39  ;;  %v1032_v44 = vld [vmem:[%s1228_s28 + $0x20] sm:$0xff]   ;;  %v1034_v46 = vld [vmem:[%s1228_s28 + $0x28] sm:$0xff]   ;;  %v1035_v47 = vld [vmem:[%s1228_s28 + $0x70] sm:$0xff]  }
  0x39   : > { %516 = vmatpush1.bf16.msra.mxu0 %v1006_v23  ;;  %v1036_v48 = vld [vmem:[%s1228_s28 + $0x30] sm:$0xff]   ;;  %v1037_v49 = vld [vmem:[%s1228_s28 + $0x78] sm:$0xff]   ;;  %v413_v54 = vld [vmem:[%s379_s16] sm:$0x3] }
  0x3a   : > { %517 = vmatprep.subr.bf16.mxu0 %v1007_v24  ;;  %v1038_v50 = vld [vmem:[%s1228_s28 + $0x38] sm:$0xff]   ;;  %v418_v56 = vrot.slane %v413_v54, %v417_v53  ;;  %v422_v57 = vrot.slane %v413_v54, %v421_v55  ;;  %v575_v29 = vld [vmem:[#allocation2 + $0x8] sm:$0xff] }
  0x3b   : > { %930 = vmatpush3.bf16.msra.mxu1 %v1028_v40 }
  0x3c   : > { %931 = vmatprep.subr.bf16.mxu1 %v1029_v41 }
  0x3d   : > { %518 = vmatpush1.bf16.msra.mxu0 %v1009_v25  ;;  %v574_v25 = vld [vmem:[#allocation2] sm:$0xff] }
  0x3e   : > { %519 = vmatprep.subr.bf16.mxu0 %v1010_v26 }
  0x3f   : > { %932 = vmatpush3.bf16.msra.mxu1 %v1030_v42 }
  0x40   : > { %933 = vmatprep.subr.bf16.mxu1 %v1031_v43 }
  0x41   : > { %520 = vmatpush1.bf16.msra.mxu0 %v1012_v28 }
  0x42   : > { %521 = vmatprep.subr.bf16.mxu0 %v1013_v31 }
  0x43   : > { %934 = vmatpush3.bf16.msra.mxu1 %v1032_v44 }
  0x44   : > { %935 = vmatprep.subr.bf16.mxu1 %v1033_v45 }
  0x45   : > { %522 = vmatpush1.bf16.msra.mxu0 %v1015_v33 }
  0x46   : > { %523 = vmatprep.subr.bf16.mxu0 %v1016_v34 }
  0x47   : > { %936 = vmatpush3.bf16.msra.mxu1 %v1034_v46 }
  0x48   : > { %937 = vmatprep.subr.bf16.mxu1 %v1035_v47 }
  0x49   : > { %524 = vmatpush1.bf16.msra.mxu0 %v1018_v35  ;;  %v919_v35 = vld [vmem:[%s1324_s4] ss:$0 sm:$0xff] (!%p918_p12) }
  0x4a   : > { %525 = vmatprep.subr.bf16.mxu0 %v1019_v36 }
  0x4b   : > { %938 = vmatpush3.bf16.msra.mxu1 %v1036_v48 }
  0x4c   : > { %939 = vmatprep.subr.bf16.mxu1 %v1037_v49 }
  0x4d   : > { %526 = vmatpush1.bf16.msra.mxu0 %v1021_v37 }
  0x4f   : > { %940 = vmatpush3.bf16.msra.mxu1 %v1038_v50 }
  0x50   : > { %544 = vmatmul.mubr.bf16.vlgmr.msra.gmra.mrb[0].mxu0 %v1022_v38 }
 0x123   : > { %v545_v58 = vpop.f32.mrb[0].mxu0 }
 0x124   : > { %v546_v59 = vadd.f32 %v545_v58, %v418_v56  ;;  %v547_v60 = vpop.f32.mrb[1].mxu0 }
 0x125   : > { %v548_v61 = vadd.f32 %v547_v60, %v422_v57  ;;  %v549_v62 = vpop.f32.mrb[2].mxu0 }
 0x126   : > { %v558_v63 = vmul.f32 0.70710677, %v546_v59  ;;  %v550_v0 = vadd.f32 %v549_v62, %v418_v56  ;;  %v551_v1 = vpop.f32.mrb[3].mxu0  ;;  %v554_v12 = vmul.f32 0.5, %v546_v59 }
 0x127   : > { %v559_v2 = vmul.f32 0.70710677, %v548_v61  ;;  %v552_v3 = vadd.f32 %v551_v1, %v422_v57  ;;  %v555_v15 = vmul.f32 0.5, %v548_v61 }
 0x128   : > { %1039 = verf.f32 %v558_v63  ;;  %v560_v4 = vmul.f32 0.70710677, %v550_v0  ;;  %v556_v13 = vmul.f32 0.5, %v550_v0 }
 0x129   : > { %1041 = verf.f32 %v559_v2  ;;  %v561_v5 = vmul.f32 0.70710677, %v552_v3  ;;  %v557_v16 = vmul.f32 0.5, %v552_v3 }
 0x12a   : > { %1043 = verf.f32 %v560_v4 }
 0x12b   : > { %1045 = verf.f32 %v561_v5 }
 0x132   : > { %v1040_v6 = vpop.eup %1039 }
 0x133   : > { %v1042_v7 = vpop.eup %1041  ;;  %v566_v8 = vadd.f32 1.0, %v1040_v6 }
 0x134   : > { %v1044_v9 = vpop.eup %1043  ;;  %v567_v10 = vadd.f32 1.0, %v1042_v7 }
 0x135   : > { %v1046_v11 = vpop.eup %1045  ;;  %v568_v14 = vadd.f32 1.0, %v1044_v9  ;;  %v570_v18 = vmul.f32 %v566_v8, %v554_v12 }
 0x136   : > { %v569_v17 = vadd.f32 1.0, %v1046_v11  ;;  %v571_v20 = vmul.f32 %v567_v10, %v555_v15 }
 0x137   : > { %v572_v19 = vmul.f32 %v568_v14, %v556_v13 }
 0x138   : > { %v573_v21 = vmul.f32 %v569_v17, %v557_v16 }
 0x139   : > { %v576_v22 = vpack.c.bf16 %v572_v19, %v570_v18 }
 0x13a   : > { %v577_v23 = vpack.c.bf16 %v573_v21, %v571_v20 }
 0x13c   : > { %738 = vmatprep.mubr.bf16.mxu1 %v577_v23 }
 0x13d   : > { %739 = vmatmul.mubr.bf16.vlgmr.msra.gmra.mrb[0].mxu1 %v576_v22 }
 0x210   : > { %v941_v24 = vpop.f32.mrb[0].mxu1 }
 0x211   : > { %v942_v26 = vpop.f32.mrb[1].mxu1 }
 0x212   : > { %v943_v27 = vadd.f32 %v942_v26, %v941_v24  ;;  %v944_v28 = vpop.f32.mrb[2].mxu1  ;;  %754 = sbr.rel (%p918_p12) target bundleno = 547 (0x223), region = 86 }
 0x213   : > { %v945_v30 = vpop.f32.mrb[3].mxu1 }
 0x214   : > { %v747_v31 = vadd.f32 %v943_v27, %v574_v25  ;;  %v946_v32 = vadd.f32 %v945_v30, %v944_v28 }
 0x216   : > { %749 = vst [vmem:[#allocation2] sm:$0xff] %v747_v31  ;;  %v748_v33 = vadd.f32 %v946_v32, %v575_v29 }
 0x218   : > { %750 = vst [vmem:[#allocation2 + $0x8] sm:$0xff] %v748_v33 }
 0x21d   : > { %v755_v34 = vld [vmem:[#allocation2] sm:$0xff] }
 0x21e   : > { %v764_v37 = vadd.f32 %v919_v35, %v755_v34 }
 0x21f   : > { %v756_v36 = vld [vmem:[#allocation2 + $0x8] sm:$0xff] }
 0x220   : > { %v765_v38 = vadd.f32 %v919_v35, %v756_v36  ;;  %766 = vst [vmem:[#allocation4] sm:$0xff] %v764_v37 }
 0x222   : > { %767 = vst [vmem:[#allocation4 + $0x8] sm:$0xff] %v765_v38 }
 0x223 PF: > { %p1279_p13 = scmp.eq.s32.totalorder %s872_s23, 1  ;;  %s1119_s20 = smov [#allocation4]  }
 0x224   : > { %s777_s11 = sshll.u32 %s1119_s20, 4  ;;  %s778_s11 = int_to_ptr.vmem [resolvable:$true] %s777_s11 }
 0x225   : > { %s1047_s12 = scalar_lea.vmem %s778_s11, 256  ;;  %p1054_p3 = scmp.lt.s32.totalorder %s778_s11, %s778_s11 }
 0x226   : > { %p1048_p0 = scmp.ne.s32.totalorder %s778_s11, %s1047_s12  ;;  %p1055_p4 = scmp.lt.s32.totalorder %s1047_s12, %s1047_s12 }
 0x228   : > { %p1049_p1 = pnand %p1048_p0, %p1279_p13  ;;  %p1056_p5 = por %p1055_p4, %p1054_p3 }
 0x22a   : > { %p1050_p2 = pneg %p1049_p1 }
 0x22c   : > { %p1057_p6 = pnand %p1056_p5, %p1050_p2 }
 0x22e   : > { %1060 = shalt.err (!%p1057_p6)
}
 0x22f   : > { %s1061_s23 = scalar_lea.hbm %s1325_s5, 256 }
 0x230   : > { %p1062_p7 = scmp.ne.s32.totalorder %s1325_s5, %s1061_s23  ;;  %p1067_p10 = scmp.lt.u32.totalorder %s1061_s23, %s1325_s5 }
 0x232   : > { %p1063_p8 = pnand %p1062_p7, %p1279_p13 }
 0x234   : > { %p1064_p9 = pneg %p1063_p8 }
 0x236   : > { %p1069_p11 = pnand %p1067_p10, %p1064_p9 }
 0x238   : > { %1072 = shalt.err (!%p1069_p11)
}
 0x239   : > { %s1120_s26 = smov 128   ;;  %s1121_s28 = smov 8  }
 0x23a   : > { %948 = dma.vmem_to_hbm [thread:$0]  (%p1279_p13), %s778_s11, 256, %s1325_s5, [#allocation5], %s1120_s26, %s1120_s26, %s1121_s28  }
 0x23b   : > { %1094 = dma.done.wait (%p1279_p13), [#allocation5], 256  }
 0x23c   : > { %1096 = vsyncadd (%p1279_p13), [#allocation5], 4294967040 }
 0x23d PF: > { %s16_s22 = sadd.s32 1, %s1115_s22   ;;  %s1327_s18 = smov %s1103_s19 }
 0x23e   : > { %p13_p12 = scmp.ge.s32.totalorder %s16_s22, 4   ;;  %s1328_s19 = smov %s1188_s27 }
 0x23f   : > { %s1329_s20 = smov %s1111_s21  ;;  %s1330_s21 = smov %s1332_s24 }
 0x240   :  { %15 = sbr.rel (!%p13_p12) target bundleno = 3 (0x3), region = 128 }
 0x247   :  { %793 = vsyncpa [#allocation5], 1 }
 0x248   :  { %795 = vsyncpa [#allocation5 + $0x1], 1 }

</bundles_post_ra>
